<compile_context>
chip_gen: v7x
topology: tpu7x:2x2x1
jax: 0.10.0
libtpu: 0.0.40
codegen_flags: <defaults>
</compile_context>

<pallas_src>
import jax
import jax.numpy as jnp
from jax.experimental import pallas as pl
from jax.experimental.pallas import tpu as pltpu

LANE = 128


def _relu_mlp_kernel(w1_ref, w2_ref, x_ref, o_ref):
    """conv1x1 -> ReLU -> conv1x1 -> ReLU on one (B, C, rows, 128) block.

    w1_ref, w2_ref: (C*C,) float32 in SMEM, row-major (out_ch, in_ch).
    x_ref, o_ref:   (B, C, rows, 128) float32 blocks in VMEM. Each channel
    plane (B, rows, 128) is a dense lane/sublane slab.
    """
    C = x_ref.shape[1]
    x = x_ref[...]                                   # one block load
    x_c = [x[:, c, :, :] for c in range(C)]          # (B, rows, 128) slabs

    def mix_relu(w_ref, chans):
        out = []
        for o in range(C):
            acc = w_ref[o * C] * chans[0]
            for k in range(1, C):
                acc = acc + w_ref[o * C + k] * chans[k]
            out.append(jnp.maximum(acc, 0.0))        # ReLU
        return out

    h = mix_relu(w1_ref, x_c)                        # conv1 + ReLU
    y = mix_relu(w2_ref, h)                          # conv2 + ReLU

    for o in range(C):                               # direct per-channel stores
        o_ref[:, o, :, :] = y[o].astype(o_ref.dtype)


def relu_model_forward(x_nchw, w1, w2, *, target_block_bytes=4 << 20):
    """Forward pass of ReLUModel.

    Args:
      x_nchw: (N, C, H, W) float32 input (PyTorch layout).
      w1, w2: (C, C, 1, 1) conv weights (PyTorch layout), no bias.
    Returns:
      (N, C, H, W) float32 output.
    """
    N, C, H, W = x_nchw.shape
    assert w1.shape == (C, C, 1, 1), w1.shape
    assert w2.shape == (C, C, 1, 1), w2.shape

    P = H * W
    pad = (-P) % LANE
    x = x_nchw.reshape(N, C, P)                      # free reshape, no transpose
    if pad:
        # Safe only because convs are bias-free; padded lanes sliced off below.
        x = jnp.pad(x, ((0, 0), (0, 0), (0, pad)))
    Pp = P + pad
    R = Pp // LANE                                   # 128-pixel rows per plane
    x = x.reshape(N, C, R, LANE)

    # 1x1 conv kernels flattened to 1D SMEM vectors (row-major (out, in)).
    w1_v = w1.reshape(C * C).astype(x.dtype)
    w2_v = w2.reshape(C * C).astype(x.dtype)

    itemsize = jnp.dtype(x.dtype).itemsize
    bytes_per_row = C * LANE * itemsize

    if N * R * bytes_per_row <= target_block_bytes:
        # Small problem: one grid step, one block (full-array block shapes are
        # legal even when R is not a multiple of 8).
        grid = (1,)
        block = (N, C, R, LANE)
        index_map = lambda i: (0, 0, 0, 0)
        dim_sem = ("arbitrary",)
    else:
        # Large problem: tile the row axis in multiples of 8 sublanes,
        # targeting ~target_block_bytes per input block; the edge tile is
        # masked by Pallas (no reduction crosses the pixel axis, so safe).
        if R >= 8:
            rp = (target_block_bytes // bytes_per_row) // 8 * 8
            rp = int(max(8, min(rp, (R // 8) * 8)))
        else:
            rp = R                                   # full row extent; tile over N only
        grid = (N, pl.cdiv(R, rp))
        block = (1, C, rp, LANE)
        index_map = lambda n, j: (n, 0, j, 0)
        dim_sem = ("parallel", "parallel")
        # TODO(synk): mark the row axis pltpu.CORE_PARALLEL on v7x to shard
        # very large inputs across both TensorCores.

    out = pl.pallas_call(
        _relu_mlp_kernel,
        out_shape=jax.ShapeDtypeStruct((N, C, R, LANE), x.dtype),
        grid=grid,
        in_specs=[
            # Tiny 1D weight vectors live in SMEM: scalar reads, no per-step
            # VMEM double-buffering / DMA descriptors.
            pl.BlockSpec(memory_space=pltpu.MemorySpace.SMEM),
            pl.BlockSpec(memory_space=pltpu.MemorySpace.SMEM),
            pl.BlockSpec(block, index_map),
        ],
        out_specs=pl.BlockSpec(block, index_map),
        compiler_params=pltpu.CompilerParams(
            dimension_semantics=dim_sem,
            vmem_limit_bytes=32 << 20),
    )(w1_v, w2_v, x)

    out = out.reshape(N, C, Pp)
    if pad:
        out = out[:, :, :P]
    return out.reshape(N, C, H, W)


def relu_model_reference(x_nchw, w1, w2):
    """Plain-JAX reference (1x1 conv == per-pixel channel matmul)."""
    N, C, H, W = x_nchw.shape
    x = x_nchw.reshape(N, C, H * W)
    w1_m = w1.reshape(C, C)
    w2_m = w2.reshape(C, C)
    h = jnp.maximum(jnp.einsum("oc,ncp->nop", w1_m, x), 0.0)
    y = jnp.maximum(jnp.einsum("oc,ncp->nop", w2_m, h), 0.0)
    return y.reshape(N, C, H, W)


if __name__ == "__main__":
    # Shapes consistent with ReLUModel(num_channels=3, kernel_size=1).
    N, C, H, W = 2, 3, 16, 16

    key = jax.random.PRNGKey(0)
    kx, k1, k2 = jax.random.split(key, 3)
    x = jax.random.normal(kx, (N, C, H, W), dtype=jnp.float32)
    # Conv2d weight shape: (out_channels, in_channels, kH, kW), bias=False.
    w1 = jax.random.normal(k1, (C, C, 1, 1), dtype=jnp.float32) * 0.5
    w2 = jax.random.normal(k2, (C, C, 1, 1), dtype=jnp.float32) * 0.5

    out = relu_model_forward(x, w1, w2)
    out = jax.block_until_ready(out)

    ref = relu_model_reference(x, w1, w2)
    assert out.shape == (N, C, H, W), out.shape
    assert jnp.allclose(out, ref, atol=1e-5, rtol=1e-5), "mismatch vs reference"

    print("KERNEL_OK")
</pallas_src>

<mosaic_0001>
module attributes {stable_mosaic.version = 11 : i64} {
  func.func @_relu_mlp_kernel(%arg0: i32, %arg1: memref<9xf32, #tpu.memory_space<smem>>, %arg2: memref<9xf32, #tpu.memory_space<smem>>, %arg3: memref<2x3x2x128xf32, #tpu.memory_space<vmem>>, %arg4: memref<2x3x2x128xf32, #tpu.memory_space<vmem>>) attributes {dimension_semantics = [#tpu.dimension_semantics<arbitrary>], iteration_bounds = array<i64: 1>, scalar_prefetch = 0 : i64, scratch_operands = 0 : i64, tpu.core_type = #tpu.core_type<tc>, window_params = [{transform_indices = @transform_0, window_bounds = array<i64: 9>}, {transform_indices = @transform_1, window_bounds = array<i64: 9>}, {pipeline_mode = #tpu.pipeline_mode<synchronous>, transform_indices = @transform_2, window_bounds = array<i64: 2, 3, 2, 128>}, {pipeline_mode = #tpu.pipeline_mode<synchronous>, transform_indices = @transform_3, window_bounds = array<i64: 2, 3, 2, 128>}]} {
    %c0 = arith.constant 0 : index
    %c0_0 = arith.constant 0 : index
    %c0_1 = arith.constant 0 : index
    %c0_2 = arith.constant 0 : index
    %0 = vector.load %arg3[%c0, %c0_0, %c0_1, %c0_2] : memref<2x3x2x128xf32, #tpu.memory_space<vmem>>, vector<2x3x2x128xf32>
    %1 = vector.extract_strided_slice %0 {offsets = [0, 0, 0, 0], sizes = [2, 1, 2, 128], strides = [1, 1, 1, 1]} : vector<2x3x2x128xf32> to vector<2x1x2x128xf32>
    %2 = vector.shape_cast %1 : vector<2x1x2x128xf32> to vector<2x2x128xf32>
    %3 = vector.extract_strided_slice %0 {offsets = [0, 1, 0, 0], sizes = [2, 1, 2, 128], strides = [1, 1, 1, 1]} : vector<2x3x2x128xf32> to vector<2x1x2x128xf32>
    %4 = vector.shape_cast %3 : vector<2x1x2x128xf32> to vector<2x2x128xf32>
    %5 = vector.extract_strided_slice %0 {offsets = [0, 2, 0, 0], sizes = [2, 1, 2, 128], strides = [1, 1, 1, 1]} : vector<2x3x2x128xf32> to vector<2x1x2x128xf32>
    %6 = vector.shape_cast %5 : vector<2x1x2x128xf32> to vector<2x2x128xf32>
    %c0_3 = arith.constant 0 : index
    %7 = memref.load %arg1[%c0_3] : memref<9xf32, #tpu.memory_space<smem>>
    %8 = vector.broadcast %7 : f32 to vector<2x2x128xf32>
    %9 = arith.mulf %8, %2 : vector<2x2x128xf32>
    %c1 = arith.constant 1 : index
    %10 = memref.load %arg1[%c1] : memref<9xf32, #tpu.memory_space<smem>>
    %11 = vector.broadcast %10 : f32 to vector<2x2x128xf32>
    %12 = arith.mulf %11, %4 : vector<2x2x128xf32>
    %13 = arith.addf %9, %12 : vector<2x2x128xf32>
    %c2 = arith.constant 2 : index
    %14 = memref.load %arg1[%c2] : memref<9xf32, #tpu.memory_space<smem>>
    %15 = vector.broadcast %14 : f32 to vector<2x2x128xf32>
    %16 = arith.mulf %15, %6 : vector<2x2x128xf32>
    %17 = arith.addf %13, %16 : vector<2x2x128xf32>
    %cst = arith.constant 0.000000e+00 : f32
    %18 = vector.broadcast %cst : f32 to vector<2x2x128xf32>
    %19 = arith.maximumf %17, %18 : vector<2x2x128xf32>
    %c3 = arith.constant 3 : index
    %20 = memref.load %arg1[%c3] : memref<9xf32, #tpu.memory_space<smem>>
    %21 = vector.broadcast %20 : f32 to vector<2x2x128xf32>
    %22 = arith.mulf %21, %2 : vector<2x2x128xf32>
    %c4 = arith.constant 4 : index
    %23 = memref.load %arg1[%c4] : memref<9xf32, #tpu.memory_space<smem>>
    %24 = vector.broadcast %23 : f32 to vector<2x2x128xf32>
    %25 = arith.mulf %24, %4 : vector<2x2x128xf32>
    %26 = arith.addf %22, %25 : vector<2x2x128xf32>
    %c5 = arith.constant 5 : index
    %27 = memref.load %arg1[%c5] : memref<9xf32, #tpu.memory_space<smem>>
    %28 = vector.broadcast %27 : f32 to vector<2x2x128xf32>
    %29 = arith.mulf %28, %6 : vector<2x2x128xf32>
    %30 = arith.addf %26, %29 : vector<2x2x128xf32>
    %cst_4 = arith.constant 0.000000e+00 : f32
    %31 = vector.broadcast %cst_4 : f32 to vector<2x2x128xf32>
    %32 = arith.maximumf %30, %31 : vector<2x2x128xf32>
    %c6 = arith.constant 6 : index
    %33 = memref.load %arg1[%c6] : memref<9xf32, #tpu.memory_space<smem>>
    %34 = vector.broadcast %33 : f32 to vector<2x2x128xf32>
    %35 = arith.mulf %34, %2 : vector<2x2x128xf32>
    %c7 = arith.constant 7 : index
    %36 = memref.load %arg1[%c7] : memref<9xf32, #tpu.memory_space<smem>>
    %37 = vector.broadcast %36 : f32 to vector<2x2x128xf32>
    %38 = arith.mulf %37, %4 : vector<2x2x128xf32>
    %39 = arith.addf %35, %38 : vector<2x2x128xf32>
    %c8 = arith.constant 8 : index
    %40 = memref.load %arg1[%c8] : memref<9xf32, #tpu.memory_space<smem>>
    %41 = vector.broadcast %40 : f32 to vector<2x2x128xf32>
    %42 = arith.mulf %41, %6 : vector<2x2x128xf32>
    %43 = arith.addf %39, %42 : vector<2x2x128xf32>
    %cst_5 = arith.constant 0.000000e+00 : f32
    %44 = vector.broadcast %cst_5 : f32 to vector<2x2x128xf32>
    %45 = arith.maximumf %43, %44 : vector<2x2x128xf32>
    %c0_6 = arith.constant 0 : index
    %46 = memref.load %arg2[%c0_6] : memref<9xf32, #tpu.memory_space<smem>>
    %47 = vector.broadcast %46 : f32 to vector<2x2x128xf32>
    %48 = arith.mulf %47, %19 : vector<2x2x128xf32>
    %c1_7 = arith.constant 1 : index
    %49 = memref.load %arg2[%c1_7] : memref<9xf32, #tpu.memory_space<smem>>
    %50 = vector.broadcast %49 : f32 to vector<2x2x128xf32>
    %51 = arith.mulf %50, %32 : vector<2x2x128xf32>
    %52 = arith.addf %48, %51 : vector<2x2x128xf32>
    %c2_8 = arith.constant 2 : index
    %53 = memref.load %arg2[%c2_8] : memref<9xf32, #tpu.memory_space<smem>>
    %54 = vector.broadcast %53 : f32 to vector<2x2x128xf32>
    %55 = arith.mulf %54, %45 : vector<2x2x128xf32>
    %56 = arith.addf %52, %55 : vector<2x2x128xf32>
    %cst_9 = arith.constant 0.000000e+00 : f32
    %57 = vector.broadcast %cst_9 : f32 to vector<2x2x128xf32>
    %58 = arith.maximumf %56, %57 : vector<2x2x128xf32>
    %c3_10 = arith.constant 3 : index
    %59 = memref.load %arg2[%c3_10] : memref<9xf32, #tpu.memory_space<smem>>
    %60 = vector.broadcast %59 : f32 to vector<2x2x128xf32>
    %61 = arith.mulf %60, %19 : vector<2x2x128xf32>
    %c4_11 = arith.constant 4 : index
    %62 = memref.load %arg2[%c4_11] : memref<9xf32, #tpu.memory_space<smem>>
    %63 = vector.broadcast %62 : f32 to vector<2x2x128xf32>
    %64 = arith.mulf %63, %32 : vector<2x2x128xf32>
    %65 = arith.addf %61, %64 : vector<2x2x128xf32>
    %c5_12 = arith.constant 5 : index
    %66 = memref.load %arg2[%c5_12] : memref<9xf32, #tpu.memory_space<smem>>
    %67 = vector.broadcast %66 : f32 to vector<2x2x128xf32>
    %68 = arith.mulf %67, %45 : vector<2x2x128xf32>
    %69 = arith.addf %65, %68 : vector<2x2x128xf32>
    %cst_13 = arith.constant 0.000000e+00 : f32
    %70 = vector.broadcast %cst_13 : f32 to vector<2x2x128xf32>
    %71 = arith.maximumf %69, %70 : vector<2x2x128xf32>
    %c6_14 = arith.constant 6 : index
    %72 = memref.load %arg2[%c6_14] : memref<9xf32, #tpu.memory_space<smem>>
    %73 = vector.broadcast %72 : f32 to vector<2x2x128xf32>
    %74 = arith.mulf %73, %19 : vector<2x2x128xf32>
    %c7_15 = arith.constant 7 : index
    %75 = memref.load %arg2[%c7_15] : memref<9xf32, #tpu.memory_space<smem>>
    %76 = vector.broadcast %75 : f32 to vector<2x2x128xf32>
    %77 = arith.mulf %76, %32 : vector<2x2x128xf32>
    %78 = arith.addf %74, %77 : vector<2x2x128xf32>
    %c8_16 = arith.constant 8 : index
    %79 = memref.load %arg2[%c8_16] : memref<9xf32, #tpu.memory_space<smem>>
    %80 = vector.broadcast %79 : f32 to vector<2x2x128xf32>
    %81 = arith.mulf %80, %45 : vector<2x2x128xf32>
    %82 = arith.addf %78, %81 : vector<2x2x128xf32>
    %cst_17 = arith.constant 0.000000e+00 : f32
    %83 = vector.broadcast %cst_17 : f32 to vector<2x2x128xf32>
    %84 = arith.maximumf %82, %83 : vector<2x2x128xf32>
    %c0_18 = arith.constant 0 : index
    %c0_19 = arith.constant 0 : index
    %c0_20 = arith.constant 0 : index
    %c0_21 = arith.constant 0 : index
    %85 = vector.load %arg4[%c0_18, %c0_19, %c0_20, %c0_21] : memref<2x3x2x128xf32, #tpu.memory_space<vmem>>, vector<2x1x2x128xf32>
    %86 = vector.shape_cast %85 : vector<2x1x2x128xf32> to vector<2x2x128xf32>
    %87 = vector.shape_cast %58 : vector<2x2x128xf32> to vector<2x1x2x128xf32>
    tpu.vector_store %arg4[%c0_18, %c0_19, %c0_20, %c0_21], %87 {strides = array<i32>} : memref<2x3x2x128xf32, #tpu.memory_space<vmem>>, vector<2x1x2x128xf32>,
    %c0_22 = arith.constant 0 : index
    %c1_23 = arith.constant 1 : index
    %c0_24 = arith.constant 0 : index
    %c0_25 = arith.constant 0 : index
    %88 = vector.load %arg4[%c0_22, %c1_23, %c0_24, %c0_25] : memref<2x3x2x128xf32, #tpu.memory_space<vmem>>, vector<2x1x2x128xf32>
    %89 = vector.shape_cast %88 : vector<2x1x2x128xf32> to vector<2x2x128xf32>
    %90 = vector.shape_cast %71 : vector<2x2x128xf32> to vector<2x1x2x128xf32>
    tpu.vector_store %arg4[%c0_22, %c1_23, %c0_24, %c0_25], %90 {strides = array<i32>} : memref<2x3x2x128xf32, #tpu.memory_space<vmem>>, vector<2x1x2x128xf32>,
    %c0_26 = arith.constant 0 : index
    %c2_27 = arith.constant 2 : index
    %c0_28 = arith.constant 0 : index
    %c0_29 = arith.constant 0 : index
    %91 = vector.load %arg4[%c0_26, %c2_27, %c0_28, %c0_29] : memref<2x3x2x128xf32, #tpu.memory_space<vmem>>, vector<2x1x2x128xf32>
    %92 = vector.shape_cast %91 : vector<2x1x2x128xf32> to vector<2x2x128xf32>
    %93 = vector.shape_cast %84 : vector<2x2x128xf32> to vector<2x1x2x128xf32>
    tpu.vector_store %arg4[%c0_26, %c2_27, %c0_28, %c0_29], %93 {strides = array<i32>} : memref<2x3x2x128xf32, #tpu.memory_space<vmem>>, vector<2x1x2x128xf32>,
    return
  }
  func.func @transform_0(%arg0: i32) -> i32 {
    %c0_i32 = arith.constant 0 : i32
    %c0_i32_0 = arith.constant 0 : i32
    return %c0_i32 : i32
  }
  func.func @transform_1(%arg0: i32) -> i32 {
    %c0_i32 = arith.constant 0 : i32
    %c0_i32_0 = arith.constant 0 : i32
    return %c0_i32 : i32
  }
  func.func @transform_2(%arg0: i32) -> (i32, i32, i32, i32) {
    %c0_i32 = arith.constant 0 : i32
    %c0_i32_0 = arith.constant 0 : i32
    %c0_i32_1 = arith.constant 0 : i32
    %c0_i32_2 = arith.constant 0 : i32
    %c0_i32_3 = arith.constant 0 : i32
    return %c0_i32, %c0_i32_0, %c0_i32_1, %c0_i32_2 : i32, i32, i32, i32
  }
  func.func @transform_3(%arg0: i32) -> (i32, i32, i32, i32) {
    %c0_i32 = arith.constant 0 : i32
    %c0_i32_0 = arith.constant 0 : i32
    %c0_i32_1 = arith.constant 0 : i32
    %c0_i32_2 = arith.constant 0 : i32
    %c0_i32_3 = arith.constant 0 : i32
    return %c0_i32, %c0_i32_0, %c0_i32_1, %c0_i32_2 : i32, i32, i32, i32
  }
}

</mosaic_0001>

<bundles_post_ra>
// kernel: tpu_custom_call.1
= control target key start
LH: loop header
LB: loop body
LE: loop exit
PB: predicated region body
PF: predicated region fallthrough
CT: control target
= control target key end

     0   :  { %8 = vsyncpa [#allocation5], 0  ;;  %s414_s0 = inlined_call_operand.hbm [shape: f32[9], index: 0, kind: input, shape index: {}]   ;;  %s415_s1 = inlined_call_operand.vmem [shape: f32[9], index: 1, kind: input, shape index: {}]   ;;  %s416_s2 = inlined_call_operand.hbm [shape: f32[2,3,2,128], index: 2, kind: input, shape index: {}]   ;;  %s417_s3 = inlined_call_operand.hbm [shape: f32[2,3,2,128], index: 3, kind: output, shape index: {}]  }
   0x1   :  { %9 = vsyncpa [#allocation6], 0 }
   0x2   :  { %10 = vsyncpa [#allocation3], 0 }
   0x3   :  { %11 = vsyncpa [#allocation4], 0  ;;  %s26_s14 = sshll.u32 %s415_s1, 4  ;;  %s215_s17 = scalar_lea.hbm %s414_s0, 16  ;;  %s27_s14 = int_to_ptr.vmem [resolvable:$true] %s26_s14 }
   0x4   :  { %p216_p0 = scmp.ne.s32.totalorder %s414_s0, %s215_s17  ;;  %p219_p1 = scmp.lt.u32.totalorder %s215_s17, %s414_s0 }
   0x6   :  { %p221_p2 = pnand %p219_p1, %p216_p0 }
   0x8   :  { %224 = shalt.err (!%p221_p2)
}
   0x9   :  { %s289_s22 = smov [#allocation2]   ;;  %s225_s1 = scalar_lea.vmem %s27_s14, 16 }
   0xa   :  { %19 = dma.hbm_to_smem %s414_s0, 16, %s289_s22, [#allocation5]  }
   0xb   :  { %p226_p3 = scmp.ne.s32.totalorder %s27_s14, %s225_s1  ;;  %p230_p4 = scmp.lt.s32.totalorder %s27_s14, %s27_s14 }
   0xc   :  { %p231_p5 = scmp.lt.s32.totalorder %s225_s1, %s225_s1 }
   0xe   :  { %p232_p6 = por %p231_p5, %p230_p4 }
  0x10   :  { %p233_p7 = pnand %p232_p6, %p226_p3 }
  0x12   :  { %236 = shalt.err (!%p233_p7)
}
  0x13   :  { %s290_s25 = smov [#allocation7]   ;;  %s291_s26 = smov [#allocation8]  }
  0x14   :  { %29 = dma.vmem_to_smem %s27_s14, 16, %s290_s25, [#allocation6]  }
  0x15   :  { %s35_s27 = sshll.u32 %s291_s26, 4  ;;  %s237_s30 = scalar_lea.hbm %s416_s2, 192  ;;  %s36_s27 = int_to_ptr.vmem [resolvable:$true] %s35_s27 }
  0x16   :  { %p238_p8 = scmp.ne.s32.totalorder %s416_s2, %s237_s30  ;;  %p241_p9 = scmp.lt.u32.totalorder %s237_s30, %s416_s2 }
  0x18   :  { %p243_p10 = pnand %p241_p9, %p238_p8 }
  0x1a   :  { %246 = shalt.err (!%p243_p10)
}
  0x1b   :  { %s247_s7 = scalar_lea.vmem %s36_s27, 192  ;;  %p252_p12 = scmp.lt.s32.totalorder %s36_s27, %s36_s27 }
  0x1c   :  { %p248_p11 = scmp.ne.s32.totalorder %s36_s27, %s247_s7  ;;  %p253_p13 = scmp.lt.s32.totalorder %s247_s7, %s247_s7 }
  0x1e   :  { %p254_p0 = por %p253_p13, %p252_p12 }
  0x20   :  { %p255_p1 = pnand %p254_p0, %p248_p11 }
  0x22   :  { %258 = shalt.err (!%p255_p1)
}
  0x23   :  { %s292_s8 = smov 32   ;;  %s293_s9 = smov 2  }
  0x24   :  { %41 = dma.hbm_to_vmem [thread:$0]  %s416_s2, 192, %s36_s27, [#allocation3], %s292_s8, %s292_s8, %s293_s9  }
  0x25   :  { %281 = dma.done.wait [#allocation5], 16  }
  0x26   :  { %282 = vsyncadd [#allocation5], 4294967280 }
  0x27   :  { %283 = dma.done.wait [#allocation6], 16  }
  0x28   :  { %284 = vsyncadd [#allocation6], 4294967280 }
  0x29   :  { %285 = dma.done.wait [#allocation3], 192  }
  0x2a   :  { %286 = vsyncadd [#allocation3], 4294967104 }
  0x2b   :  { %51 = sfence }
  0x2c   :  { %s345_s12 = sld [smem:[#allocation2]]  ;;  %s347_s13 = sld [smem:[#allocation2 + $0x1]]  ;;  %v52_v0 = vld [vmem:[#allocation8] sm:$0x3]  ;;  %v53_v1 = vld [vmem:[#allocation8 + $0x2] sm:$0x3] }
  0x2d   :  { %s349_s14 = sld [smem:[#allocation2 + $0x2]]  ;;  %s351_s15 = sld [smem:[#allocation2 + $0x3]]  ;;  %v54_v2 = vld [vmem:[#allocation8 + $0x4] sm:$0x3]  ;;  %v55_v13 = vld [vmem:[#allocation8 + $0x6] sm:$0x3] }
  0x2e   :  { %s353_s16 = sld [smem:[#allocation2 + $0x4]]  ;;  %s355_s2 = sld [smem:[#allocation2 + $0x5]]  ;;  %v56_v18 = vld [vmem:[#allocation8 + $0x8] sm:$0x3]  ;;  %v57_v23 = vld [vmem:[#allocation8 + $0xa] sm:$0x3] }
  0x2f   :  { %s357_s17 = sld [smem:[#allocation2 + $0x6]]  ;;  %s359_s18 = sld [smem:[#allocation2 + $0x7]] }
  0x30   :  { %s361_s19 = sld [smem:[#allocation2 + $0x8]]  ;;  %s365_s21 = sld [smem:[#allocation7 + $0x1]] }
  0x31   :  { %s363_s20 = sld [smem:[#allocation7]]  ;;  %s367_s22 = sld [smem:[#allocation7 + $0x2]] }
  0x32   :  { %v59_v3 = vstv %s345_s12  ;;  %v63_v4 = vstv %s347_s13  ;;  %s376_s23 = sld [smem:[#allocation7 + $0x3]]  ;;  %s378_s24 = sld [smem:[#allocation7 + $0x4]] }
  0x33   :  { %v60_v5 = vmul.f32 %v59_v3, %v52_v0  ;;  %v64_v6 = vmul.f32 %v63_v4, %v53_v1  ;;  %v69_v7 = vstv %s349_s14  ;;  %v77_v8 = vstv %s351_s15  ;;  %s383_s1 = sld [smem:[#allocation7 + $0x5]]  ;;  %s387_s25 = sld [smem:[#allocation7 + $0x6]] }
  0x34   :  { %v70_v9 = vmul.f32 %v69_v7, %v54_v2  ;;  %v78_v10 = vmul.f32 %v77_v8, %v52_v0  ;;  %v81_v11 = vstv %s353_s16  ;;  %v87_v12 = vstv %s355_s2  ;;  %s389_s26 = sld [smem:[#allocation7 + $0x7]]  ;;  %s391_s27 = sld [smem:[#allocation7 + $0x8]] }
  0x35   :  { %v66_v14 = vadd.f32 %v64_v6, %v60_v5  ;;  %v82_v15 = vmul.f32 %v81_v11, %v53_v1  ;;  %v88_v16 = vmul.f32 %v87_v12, %v54_v2  ;;  %v95_v17 = vstv %s357_s17  ;;  %s294_s28 = smov [#allocation9]  }
  0x36   :  { %v96_v19 = vmul.f32 %v95_v17, %v52_v0  ;;  %v99_v20 = vstv %s359_s18  ;;  %v105_v21 = vstv %s361_s19  ;;  %v117_v28 = vstv %s365_s21  ;;  %s179_s29 = sshll.u32 %s294_s28, 4  ;;  %s180_s29 = int_to_ptr.vmem [resolvable:$true] %s179_s29 }
  0x37   :  { %v113_v22 = vstv %s363_s20  ;;  %v72_v24 = vadd.f32 %v70_v9, %v66_v14  ;;  %v84_v25 = vadd.f32 %v82_v15, %v78_v10  ;;  %v100_v26 = vmul.f32 %v99_v20, %v53_v1  ;;  %s259_s30 = scalar_lea.vmem %s180_s29, 192  ;;  %p264_p3 = scmp.lt.s32.totalorder %s180_s29, %s180_s29 }
  0x38   :  { %v106_v27 = vmul.f32 %v105_v21, %v54_v2  ;;  %v123_v29 = vstv %s367_s22  ;;  %v61_v30 = vmul.f32 %v59_v3, %v55_v13  ;;  %v65_v31 = vmul.f32 %v63_v4, %v56_v18  ;;  %p260_p2 = scmp.ne.s32.totalorder %s180_s29, %s259_s30  ;;  %p265_p4 = scmp.lt.s32.totalorder %s259_s30, %s259_s30 }
  0x39   :  { %v74_v32 = vmax.f32 %v72_v24, 0.0  ;;  %v90_v33 = vadd.f32 %v88_v16, %v84_v25  ;;  %v102_v34 = vadd.f32 %v100_v26, %v96_v19  ;;  %v71_v35 = vmul.f32 %v69_v7, %v57_v23 }
  0x3a   :  { %v67_v36 = vadd.f32 %v65_v31, %v61_v30  ;;  %v79_v37 = vmul.f32 %v77_v8, %v55_v13  ;;  %v83_v38 = vmul.f32 %v81_v11, %v56_v18  ;;  %v89_v39 = vmul.f32 %v87_v12, %v57_v23  ;;  %p266_p5 = por %p265_p4, %p264_p3 }
  0x3b   :  { %v92_v40 = vmax.f32 %v90_v33, 0.0  ;;  %v108_v41 = vadd.f32 %v106_v27, %v102_v34  ;;  %v114_v42 = vmul.f32 %v113_v22, %v74_v32  ;;  %v97_v43 = vmul.f32 %v95_v17, %v55_v13 }
  0x3c   :  { %v73_v44 = vadd.f32 %v71_v35, %v67_v36  ;;  %v85_v45 = vadd.f32 %v83_v38, %v79_v37  ;;  %v101_v46 = vmul.f32 %v99_v20, %v56_v18  ;;  %v107_v47 = vmul.f32 %v105_v21, %v57_v23  ;;  %p267_p6 = pnand %p266_p5, %p260_p2 }
  0x3d   :  { %v110_v48 = vmax.f32 %v108_v41, 0.0  ;;  %v118_v49 = vmul.f32 %v117_v28, %v92_v40  ;;  %v131_v50 = vstv %s376_s23  ;;  %v135_v51 = vstv %s378_s24 }
  0x3e   :  { %v75_v52 = vmax.f32 %v73_v44, 0.0  ;;  %v91_v53 = vadd.f32 %v89_v39, %v85_v45  ;;  %v103_v54 = vadd.f32 %v101_v46, %v97_v43  ;;  %v132_v55 = vmul.f32 %v131_v50, %v74_v32 }
  0x3f   :  { %v120_v56 = vadd.f32 %v118_v49, %v114_v42  ;;  %v124_v57 = vmul.f32 %v123_v29, %v110_v48  ;;  %v136_v58 = vmul.f32 %v135_v51, %v92_v40  ;;  %v141_v59 = vstv %s383_s1 }
  0x40   :  { %v93_v60 = vmax.f32 %v91_v53, 0.0  ;;  %v109_v61 = vadd.f32 %v107_v47, %v103_v54  ;;  %v115_v62 = vmul.f32 %v113_v22, %v75_v52  ;;  %v142_v63 = vmul.f32 %v141_v59, %v110_v48 }
  0x41   :  { %v126_v0 = vadd.f32 %v124_v57, %v120_v56  ;;  %v138_v1 = vadd.f32 %v136_v58, %v132_v55  ;;  %v133_v2 = vmul.f32 %v131_v50, %v75_v52  ;;  %v149_v3 = vstv %s387_s25 }
  0x42   :  { %v111_v4 = vmax.f32 %v109_v61, 0.0  ;;  %v119_v5 = vmul.f32 %v117_v28, %v93_v60  ;;  %v137_v6 = vmul.f32 %v135_v51, %v93_v60  ;;  %v150_v7 = vmul.f32 %v149_v3, %v74_v32 }
  0x43   :  { %v128_v8 = vmax.f32 %v126_v0, 0.0  ;;  %v144_v9 = vadd.f32 %v142_v63, %v138_v1  ;;  %v153_v10 = vstv %s389_s26  ;;  %v159_v11 = vstv %s391_s27 }
  0x44   :  { %v121_v12 = vadd.f32 %v119_v5, %v115_v62  ;;  %v125_v13 = vmul.f32 %v123_v29, %v111_v4  ;;  %v139_v14 = vadd.f32 %v137_v6, %v133_v2  ;;  %v143_v15 = vmul.f32 %v141_v59, %v111_v4 }
  0x45   :  { %166 = vst [vmem:[#allocation9] sm:$0x3] %v128_v8  ;;  %v146_v16 = vmax.f32 %v144_v9, 0.0  ;;  %v154_v17 = vmul.f32 %v153_v10, %v92_v40  ;;  %v160_v18 = vmul.f32 %v159_v11, %v110_v48  ;;  %v151_v19 = vmul.f32 %v149_v3, %v75_v52 }
  0x46   :  { %v127_v20 = vadd.f32 %v125_v13, %v121_v12  ;;  %v145_v21 = vadd.f32 %v143_v15, %v139_v14  ;;  %v155_v22 = vmul.f32 %v153_v10, %v93_v60  ;;  %v161_v23 = vmul.f32 %v159_v11, %v111_v4 }
  0x47   :  { %169 = vst [vmem:[#allocation9 + $0x2] sm:$0x3] %v146_v16  ;;  %v156_v24 = vadd.f32 %v154_v17, %v150_v7 }
  0x48   :  { %v129_v25 = vmax.f32 %v127_v20, 0.0  ;;  %v147_v26 = vmax.f32 %v145_v21, 0.0  ;;  %v157_v27 = vadd.f32 %v155_v22, %v151_v19 }
  0x49   :  { %v162_v28 = vadd.f32 %v160_v18, %v156_v24 }
  0x4a   :  { %167 = vst [vmem:[#allocation9 + $0x6] sm:$0x3] %v129_v25  ;;  %170 = vst [vmem:[#allocation9 + $0x8] sm:$0x3] %v147_v26  ;;  %v163_v29 = vadd.f32 %v161_v23, %v157_v27 }
  0x4b   :  { %v164_v30 = vmax.f32 %v162_v28, 0.0 }
  0x4c   :  { %v165_v31 = vmax.f32 %v163_v29, 0.0 }
  0x4d   :  { %172 = vst [vmem:[#allocation9 + $0x4] sm:$0x3] %v164_v30 }
  0x4e   :  { %173 = vst [vmem:[#allocation9 + $0xa] sm:$0x3] %v165_v31 }
  0x4f   :  { %270 = shalt.err (!%p267_p6)
}
  0x50   :  { %s271_s0 = scalar_lea.hbm %s417_s3, 192 }
  0x51   :  { %p272_p7 = scmp.ne.s32.totalorder %s417_s3, %s271_s0  ;;  %p275_p8 = scmp.lt.u32.totalorder %s271_s0, %s417_s3 }
  0x53   :  { %p277_p9 = pnand %p275_p8, %p272_p7 }
  0x55   :  { %280 = shalt.err (!%p277_p9)
}
  0x56   :  { %185 = dma.vmem_to_hbm [thread:$0]  %s180_s29, 192, %s417_s3, [#allocation4], %s292_s8, %s292_s8, %s293_s9  }
  0x57   :  { %287 = dma.done.wait [#allocation4], 192  }
  0x58   :  { %288 = vsyncadd [#allocation4], 4294967104 }
  0x59   :  { %189 = vsyncpa [#allocation3], 1 }
  0x5a   :  { %190 = vsyncpa [#allocation4], 1 }
  0x5b   :  { %191 = vsyncpa [#allocation5], 1 }
  0x5c   :  { %192 = vsyncpa [#allocation6], 1 }

</bundles_post_ra>
